<compile_context>
chip_gen: v6e
topology: v6e:2x2x1
jax: 0.10.0
libtpu: 0.0.40
codegen_flags: <defaults>
</compile_context>

<pallas_src>
import functools

import jax
import jax.numpy as jnp
from jax.experimental import pallas as pl
from jax.experimental.pallas import tpu as pltpu

_LANES = 128


def _focal_tversky_kernel(
    x_ref, t_ref, out_ref, p_acc, t_acc, pt_acc, *,
    num_splits, inner_tiles, num_tiles, valid_in_last, block_elems,
):
    s = pl.program_id(0)           # split (parallel) index
    i = pl.program_id(1)           # tile index within the split
    g = s * inner_tiles + i        # global tile index
    last_inner = pl.num_programs(1) - 1

    @pl.when(i == 0)
    def _():
        p_acc[...] = jnp.zeros_like(p_acc)
        t_acc[...] = jnp.zeros_like(t_acc)
        pt_acc[...] = jnp.zeros_like(pt_acc)

    x = x_ref[...].astype(jnp.float32)
    t = t_ref[...].astype(jnp.float32)
    # Numerically stable, divide-free sigmoid (EUP tanh + 2 VPU ops).
    p = 0.5 * (jnp.tanh(0.5 * x) + 1.0)

    def accumulate(pv, tv):
        # In-tile sublane reduction -> (1, 128) accumulators: no full-tile
        # read-modify-write stream in the hot loop.
        p_acc[...] += jnp.sum(pv, axis=0, keepdims=True)
        t_acc[...] += jnp.sum(tv, axis=0, keepdims=True)
        pt_acc[...] += jnp.sum(pv * tv, axis=0, keepdims=True)

    def accumulate_masked():
        lanes = x.shape[1]
        row_idx = jax.lax.broadcasted_iota(jnp.int32, x.shape, 0)
        lane_idx = jax.lax.broadcasted_iota(jnp.int32, x.shape, 1)
        valid = (row_idx * lanes + lane_idx) < valid_in_last
        accumulate(jnp.where(valid, p, 0.0), jnp.where(valid, t, 0.0))

    full_last = (valid_in_last == block_elems)
    has_pad_tiles = (num_splits * inner_tiles != num_tiles)

    if full_last and not has_pad_tiles:
        # Every grid tile is real and fully valid: unconditional hot path.
        accumulate(p, t)
    else:
        @pl.when(g < num_tiles - 1)
        def _():
            accumulate(p, t)

        @pl.when(g == num_tiles - 1)
        def _():
            if full_last:
                accumulate(p, t)
            else:
                accumulate_masked()
        # Padding tiles (g > num_tiles - 1, clamped by the index_map)
        # contribute nothing.

    @pl.when(i == last_inner)
    def _():
        out_ref[0, 0:1, :] = p_acc[...]
        out_ref[0, 1:2, :] = t_acc[...]
        out_ref[0, 2:3, :] = pt_acc[...]


def focal_tversky_loss(inputs, targets, smooth=1e-06, alpha=0.7, beta=0.3, gamma=2):
    x = jnp.reshape(inputs, (-1,))
    t = jnp.reshape(targets, (-1,))
    n = x.shape[0]

    # Dtype-aware sublane packing: 8 rows f32, 16 bf16, 32 int8/fp8.
    def _sub(dt):
        return 8 * max(1, 4 // jnp.dtype(dt).itemsize)
    sub = max(_sub(x.dtype), _sub(t.dtype))

    rows = pl.cdiv(n, _LANES)
    block_rows = min(4096, ((rows + sub - 1) // sub) * sub)
    block_elems = block_rows * _LANES
    num_tiles = pl.cdiv(rows, block_rows)
    valid_in_last = n - (num_tiles - 1) * block_elems

    # Tail-only padding (<128 elements).  n % 128 == 0 -> zero-copy reshape.
    # TODO(synk): fully zero-copy ragged path via allow_input_fusion or a
    # plain-JAX tail-sum is possible; the <=127-element pad is already cheap.
    n_rowpad = rows * _LANES
    if n_rowpad != n:
        x = jnp.pad(x, (0, n_rowpad - n))
        t = jnp.pad(t, (0, n_rowpad - n))
    x2 = x.reshape(rows, _LANES)
    t2 = t.reshape(rows, _LANES)

    # Two-way split over a leading "parallel" axis so v7x's two TensorCores
    # each stream half of the tiles.  Single-core chips just iterate it.
    num_splits = 2 if num_tiles >= 2 else 1
    inner_tiles = pl.cdiv(num_tiles, num_splits)
    clamp = (num_splits * inner_tiles != num_tiles)

    def in_map(s, i):
        g = s * inner_tiles + i
        if clamp:
            # Padding tiles re-read the last real tile (never an OOB DMA);
            # the kernel skips their accumulation.
            g = jnp.minimum(g, num_tiles - 1)
        return (g, 0)

    kernel = functools.partial(
        _focal_tversky_kernel,
        num_splits=int(num_splits),
        inner_tiles=int(inner_tiles),
        num_tiles=int(num_tiles),
        valid_in_last=int(valid_in_last),
        block_elems=int(block_elems),
    )

    parts = pl.pallas_call(
        kernel,
        out_shape=jax.ShapeDtypeStruct((num_splits, 3, _LANES), jnp.float32),
        grid_spec=pltpu.PrefetchScalarGridSpec(
            num_scalar_prefetch=0,
            grid=(num_splits, inner_tiles),
            in_specs=[
                pl.BlockSpec((block_rows, _LANES), in_map),
                pl.BlockSpec((block_rows, _LANES), in_map),
            ],
            out_specs=pl.BlockSpec((1, 3, _LANES), lambda s, i: (s, 0, 0)),
            scratch_shapes=[
                pltpu.VMEM((1, _LANES), jnp.float32),
                pltpu.VMEM((1, _LANES), jnp.float32),
                pltpu.VMEM((1, _LANES), jnp.float32),
            ],
        ),
        compiler_params=pltpu.CompilerParams(
            dimension_semantics=("parallel", "arbitrary"),
            vmem_limit_bytes=32 * 1024 * 1024,
        ),
    )(x2, t2)

    # Tiny finalize in plain JAX (also the cross-core combine on v7x).
    s_p = jnp.sum(parts[:, 0, :])
    s_t = jnp.sum(parts[:, 1, :])
    s_pt = jnp.sum(parts[:, 2, :])
    tp = s_pt
    fp = s_p - s_pt          # sum((1 - t) * p)
    fn = s_t - s_pt          # sum(t * (1 - p))
    tversky = (tp + smooth) / (tp + alpha * fp + beta * fn + smooth)
    return (1.0 - tversky) ** gamma


def _focal_tversky_ref(inputs, targets, smooth=1e-06, alpha=0.7, beta=0.3, gamma=2):
    p = jax.nn.sigmoid(inputs.astype(jnp.float32)).reshape(-1)
    t = targets.astype(jnp.float32).reshape(-1)
    tp = jnp.sum(p * t)
    fp = jnp.sum((1.0 - t) * p)
    fn = jnp.sum(t * (1.0 - p))
    tversky = (tp + smooth) / (tp + alpha * fp + beta * fn + smooth)
    return (1.0 - tversky) ** gamma


if __name__ == "__main__":
    key = jax.random.PRNGKey(0)
    k1, k2, k3, k4 = jax.random.split(key, 4)

    # Small NCHW-like logits and binary targets (segmentation-style use case).
    x = jax.random.normal(k1, (2, 4, 16, 16), dtype=jnp.float32)
    tgt = (jax.random.uniform(k2, (2, 4, 16, 16)) > 0.5).astype(jnp.float32)

    loss = focal_tversky_loss(x, tgt)
    jax.block_until_ready(loss)
    ref = _focal_tversky_ref(x, tgt)
    assert jnp.allclose(loss, ref, rtol=1e-5, atol=1e-6), (loss, ref)

    # Extra small ragged shape (n not a multiple of 128) to exercise the
    # tail-mask / partial-tile path.
    x_r = jax.random.normal(k3, (2, 3, 7, 11), dtype=jnp.float32)
    t_r = (jax.random.uniform(k4, (2, 3, 7, 11)) > 0.5).astype(jnp.float32)
    loss_r = focal_tversky_loss(x_r, t_r)
    jax.block_until_ready(loss_r)
    ref_r = _focal_tversky_ref(x_r, t_r)
    assert jnp.allclose(loss_r, ref_r, rtol=1e-5, atol=1e-6), (loss_r, ref_r)

    print("KERNEL_OK")
</pallas_src>

<mosaic_0001>
module attributes {stable_mosaic.version = 11 : i64} {
  func.func @_focal_tversky_kernel(%arg0: i32, %arg1: i32, %arg2: memref<16x128xf32, #tpu.memory_space<vmem>>, %arg3: memref<16x128xf32, #tpu.memory_space<vmem>>, %arg4: memref<1x3x128xf32, #tpu.memory_space<vmem>>, %arg5: memref<1x128xf32, #tpu.memory_space<vmem>>, %arg6: memref<1x128xf32, #tpu.memory_space<vmem>>, %arg7: memref<1x128xf32, #tpu.memory_space<vmem>>) attributes {dimension_semantics = [#tpu.dimension_semantics<parallel>, #tpu.dimension_semantics<arbitrary>], iteration_bounds = array<i64: 1, 1>, scalar_prefetch = 0 : i64, scratch_operands = 3 : i64, tpu.core_type = #tpu.core_type<tc>, window_params = [{transform_indices = @transform_0, window_bounds = array<i64: 16, 128>}, {transform_indices = @transform_1, window_bounds = array<i64: 16, 128>}, {transform_indices = @transform_2, window_bounds = array<i64: 1, 3, 128>}]} {
    %c0_i32 = arith.constant 0 : i32
    %0 = arith.cmpi eq, %arg1, %c0_i32 : i32
    %1 = arith.extui %0 : i1 to i32
    %c0_i32_0 = arith.constant 0 : i32
    %2 = arith.cmpi ne, %1, %c0_i32_0 : i32
    scf.if %2 {
      %cst_23 = arith.constant 0.000000e+00 : f32
      %31 = vector.broadcast %cst_23 : f32 to vector<1x128xf32>
      %c0_24 = arith.constant 0 : index
      %c0_25 = arith.constant 0 : index
      %32 = vector.load %arg5[%c0_24, %c0_25] : memref<1x128xf32, #tpu.memory_space<vmem>>, vector<1x128xf32>
      tpu.vector_store %arg5[%c0_24, %c0_25], %31 {strides = array<i32>} : memref<1x128xf32, #tpu.memory_space<vmem>>, vector<1x128xf32>,
      %cst_26 = arith.constant 0.000000e+00 : f32
      %33 = vector.broadcast %cst_26 : f32 to vector<1x128xf32>
      %c0_27 = arith.constant 0 : index
      %c0_28 = arith.constant 0 : index
      %34 = vector.load %arg6[%c0_27, %c0_28] : memref<1x128xf32, #tpu.memory_space<vmem>>, vector<1x128xf32>
      tpu.vector_store %arg6[%c0_27, %c0_28], %33 {strides = array<i32>} : memref<1x128xf32, #tpu.memory_space<vmem>>, vector<1x128xf32>,
      %cst_29 = arith.constant 0.000000e+00 : f32
      %35 = vector.broadcast %cst_29 : f32 to vector<1x128xf32>
      %c0_30 = arith.constant 0 : index
      %c0_31 = arith.constant 0 : index
      %36 = vector.load %arg7[%c0_30, %c0_31] : memref<1x128xf32, #tpu.memory_space<vmem>>, vector<1x128xf32>
      tpu.vector_store %arg7[%c0_30, %c0_31], %35 {strides = array<i32>} : memref<1x128xf32, #tpu.memory_space<vmem>>, vector<1x128xf32>,
    } else {
    }
    %c0 = arith.constant 0 : index
    %c0_1 = arith.constant 0 : index
    %3 = vector.load %arg2[%c0, %c0_1] : memref<16x128xf32, #tpu.memory_space<vmem>>, vector<16x128xf32>
    %c0_2 = arith.constant 0 : index
    %c0_3 = arith.constant 0 : index
    %4 = vector.load %arg3[%c0_2, %c0_3] : memref<16x128xf32, #tpu.memory_space<vmem>>, vector<16x128xf32>
    %cst = arith.constant 5.000000e-01 : f32
    %5 = vector.broadcast %cst : f32 to vector<16x128xf32>
    %6 = arith.mulf %5, %3 : vector<16x128xf32>
    %7 = math.tanh %6 : vector<16x128xf32>
    %cst_4 = arith.constant 1.000000e+00 : f32
    %8 = vector.broadcast %cst_4 : f32 to vector<16x128xf32>
    %9 = arith.addf %7, %8 : vector<16x128xf32>
    %cst_5 = arith.constant 5.000000e-01 : f32
    %10 = vector.broadcast %cst_5 : f32 to vector<16x128xf32>
    %11 = arith.mulf %10, %9 : vector<16x128xf32>
    %c0_6 = arith.constant 0 : index
    %c0_7 = arith.constant 0 : index
    %12 = vector.load %arg5[%c0_6, %c0_7] : memref<1x128xf32, #tpu.memory_space<vmem>>, vector<1x128xf32>
    %cst_8 = arith.constant dense<0.000000e+00> : vector<128xf32>
    %13 = vector.multi_reduction <add>, %11, %cst_8 [0] : vector<16x128xf32> to vector<128xf32>
    %14 = vector.shape_cast %13 : vector<128xf32> to vector<1x128xf32>
    %15 = arith.addf %12, %14 : vector<1x128xf32>
    %c0_9 = arith.constant 0 : index
    %c0_10 = arith.constant 0 : index
    %16 = vector.load %arg5[%c0_9, %c0_10] : memref<1x128xf32, #tpu.memory_space<vmem>>, vector<1x128xf32>
    tpu.vector_store %arg5[%c0_9, %c0_10], %15 {strides = array<i32>} : memref<1x128xf32, #tpu.memory_space<vmem>>, vector<1x128xf32>,
    %c0_11 = arith.constant 0 : index
    %c0_12 = arith.constant 0 : index
    %17 = vector.load %arg6[%c0_11, %c0_12] : memref<1x128xf32, #tpu.memory_space<vmem>>, vector<1x128xf32>
    %cst_13 = arith.constant dense<0.000000e+00> : vector<128xf32>
    %18 = vector.multi_reduction <add>, %4, %cst_13 [0] : vector<16x128xf32> to vector<128xf32>
    %19 = vector.shape_cast %18 : vector<128xf32> to vector<1x128xf32>
    %20 = arith.addf %17, %19 : vector<1x128xf32>
    %c0_14 = arith.constant 0 : index
    %c0_15 = arith.constant 0 : index
    %21 = vector.load %arg6[%c0_14, %c0_15] : memref<1x128xf32, #tpu.memory_space<vmem>>, vector<1x128xf32>
    tpu.vector_store %arg6[%c0_14, %c0_15], %20 {strides = array<i32>} : memref<1x128xf32, #tpu.memory_space<vmem>>, vector<1x128xf32>,
    %c0_16 = arith.constant 0 : index
    %c0_17 = arith.constant 0 : index
    %22 = vector.load %arg7[%c0_16, %c0_17] : memref<1x128xf32, #tpu.memory_space<vmem>>, vector<1x128xf32>
    %23 = arith.mulf %11, %4 : vector<16x128xf32>
    %cst_18 = arith.constant dense<0.000000e+00> : vector<128xf32>
    %24 = vector.multi_reduction <add>, %23, %cst_18 [0] : vector<16x128xf32> to vector<128xf32>
    %25 = vector.shape_cast %24 : vector<128xf32> to vector<1x128xf32>
    %26 = arith.addf %22, %25 : vector<1x128xf32>
    %c0_19 = arith.constant 0 : index
    %c0_20 = arith.constant 0 : index
    %27 = vector.load %arg7[%c0_19, %c0_20] : memref<1x128xf32, #tpu.memory_space<vmem>>, vector<1x128xf32>
    tpu.vector_store %arg7[%c0_19, %c0_20], %26 {strides = array<i32>} : memref<1x128xf32, #tpu.memory_space<vmem>>, vector<1x128xf32>,
    %c0_i32_21 = arith.constant 0 : i32
    %28 = arith.cmpi eq, %arg1, %c0_i32_21 : i32
    %29 = arith.extui %28 : i1 to i32
    %c0_i32_22 = arith.constant 0 : i32
    %30 = arith.cmpi ne, %29, %c0_i32_22 : i32
    scf.if %30 {
      %c0_23 = arith.constant 0 : index
      %c0_24 = arith.constant 0 : index
      %31 = vector.load %arg5[%c0_23, %c0_24] : memref<1x128xf32, #tpu.memory_space<vmem>>, vector<1x128xf32>
      %c0_25 = arith.constant 0 : index
      %c0_26 = arith.constant 0 : index
      %c0_27 = arith.constant 0 : index
      %32 = vector.load %arg4[%c0_25, %c0_26, %c0_27] : memref<1x3x128xf32, #tpu.memory_space<vmem>>, vector<1x1x128xf32>
      %33 = vector.shape_cast %32 : vector<1x1x128xf32> to vector<1x128xf32>
      %34 = vector.shape_cast %31 : vector<1x128xf32> to vector<1x1x128xf32>
      tpu.vector_store %arg4[%c0_25, %c0_26, %c0_27], %34 {strides = array<i32>} : memref<1x3x128xf32, #tpu.memory_space<vmem>>, vector<1x1x128xf32>,
      %c0_28 = arith.constant 0 : index
      %c0_29 = arith.constant 0 : index
      %35 = vector.load %arg6[%c0_28, %c0_29] : memref<1x128xf32, #tpu.memory_space<vmem>>, vector<1x128xf32>
      %c0_30 = arith.constant 0 : index
      %c1 = arith.constant 1 : index
      %c0_31 = arith.constant 0 : index
      %36 = vector.load %arg4[%c0_30, %c1, %c0_31] : memref<1x3x128xf32, #tpu.memory_space<vmem>>, vector<1x1x128xf32>
      %37 = vector.shape_cast %36 : vector<1x1x128xf32> to vector<1x128xf32>
      %38 = vector.shape_cast %35 : vector<1x128xf32> to vector<1x1x128xf32>
      tpu.vector_store %arg4[%c0_30, %c1, %c0_31], %38 {strides = array<i32>} : memref<1x3x128xf32, #tpu.memory_space<vmem>>, vector<1x1x128xf32>,
      %c0_32 = arith.constant 0 : index
      %c0_33 = arith.constant 0 : index
      %39 = vector.load %arg7[%c0_32, %c0_33] : memref<1x128xf32, #tpu.memory_space<vmem>>, vector<1x128xf32>
      %c0_34 = arith.constant 0 : index
      %c2 = arith.constant 2 : index
      %c0_35 = arith.constant 0 : index
      %40 = vector.load %arg4[%c0_34, %c2, %c0_35] : memref<1x3x128xf32, #tpu.memory_space<vmem>>, vector<1x1x128xf32>
      %41 = vector.shape_cast %40 : vector<1x1x128xf32> to vector<1x128xf32>
      %42 = vector.shape_cast %39 : vector<1x128xf32> to vector<1x1x128xf32>
      tpu.vector_store %arg4[%c0_34, %c2, %c0_35], %42 {strides = array<i32>} : memref<1x3x128xf32, #tpu.memory_space<vmem>>, vector<1x1x128xf32>,
    } else {
    }
    return
  }
  func.func @transform_0(%arg0: i32, %arg1: i32) -> (i32, i32) {
    %c1_i32 = arith.constant 1 : i32
    %0 = arith.muli %arg0, %c1_i32 : i32
    %1 = arith.addi %0, %arg1 : i32
    %c0_i32 = arith.constant 0 : i32
    %c0_i32_0 = arith.constant 0 : i32
    return %1, %c0_i32 : i32, i32
  }
  func.func @transform_1(%arg0: i32, %arg1: i32) -> (i32, i32) {
    %c1_i32 = arith.constant 1 : i32
    %0 = arith.muli %arg0, %c1_i32 : i32
    %1 = arith.addi %0, %arg1 : i32
    %c0_i32 = arith.constant 0 : i32
    %c0_i32_0 = arith.constant 0 : i32
    return %1, %c0_i32 : i32, i32
  }
  func.func @transform_2(%arg0: i32, %arg1: i32) -> (i32, i32, i32) {
    %c0_i32 = arith.constant 0 : i32
    %c0_i32_0 = arith.constant 0 : i32
    %c0_i32_1 = arith.constant 0 : i32
    return %arg0, %c0_i32, %c0_i32_0 : i32, i32, i32
  }
}

</mosaic_0001>

<bundles_post_ra>
// kernel: tpu_custom_call.1
= control target key start
LH: loop header
LB: loop body
LE: loop exit
PB: predicated region body
PF: predicated region fallthrough
CT: control target
= control target key end

     0   :  { %7 = vsyncpa [#allocation6], 0  ;;  %s205_s0 = inlined_call_operand.hbm [shape: f32[16,128], index: 0, kind: input, shape index: {}]   ;;  %s206_s1 = inlined_call_operand.hbm [shape: f32[16,128], index: 1, kind: input, shape index: {}]   ;;  %s207_s2 = inlined_call_operand.vmem [shape: f32[1,3,128], index: 2, kind: output, shape index: {}]  }
   0x1   :  { %8 = vsyncpa [#allocation8], 0  ;;  %s170_s9 = smov [#allocation5]  }
   0x2   :  { %s18_s10 = sshll.u32 %s170_s9, 4  ;;  %s19_s10 = int_to_ptr.vmem [resolvable:$true] %s18_s10 }
   0x3   :  { %s134_s11 = scalar_lea.vmem %s19_s10, 256  ;;  %p139_p1 = scmp.lt.s32.totalorder %s19_s10, %s19_s10 }
   0x4   :  { %p135_p0 = scmp.ne.s32.totalorder %s19_s10, %s134_s11  ;;  %p140_p2 = scmp.lt.s32.totalorder %s134_s11, %s134_s11 }
   0x6   :  { %p141_p3 = por %p140_p2, %p139_p1 }
   0x8   :  { %p142_p4 = pnand %p141_p3, %p135_p0 }
   0xa   :  { %145 = shalt.err (!%p142_p4)
}
   0xb   :  { %s171_s12 = smov 128   ;;  %s172_s13 = smov 8  }
   0xc   :  { %24 = dma.hbm_to_vmem [thread:$0]  %s205_s0, 256, %s19_s10, [#allocation6], %s171_s12, %s171_s12, %s172_s13  }
   0xd   :  { %s173_s16 = smov [#allocation7]  }
   0xe   :  { %s34_s17 = sshll.u32 %s173_s16, 4  ;;  %s35_s17 = int_to_ptr.vmem [resolvable:$true] %s34_s17 }
   0xf   :  { %s154_s18 = scalar_lea.vmem %s35_s17, 256  ;;  %p159_p6 = scmp.lt.s32.totalorder %s35_s17, %s35_s17 }
  0x10   :  { %p155_p5 = scmp.ne.s32.totalorder %s35_s17, %s154_s18  ;;  %p160_p7 = scmp.lt.s32.totalorder %s154_s18, %s154_s18 }
  0x12   :  { %p161_p8 = por %p160_p7, %p159_p6 }
  0x14   :  { %p162_p9 = pnand %p161_p8, %p155_p5 }
  0x16   :  { %165 = shalt.err (!%p162_p9)
}
  0x17   :  { %40 = dma.hbm_to_vmem [thread:$0]  %s206_s1, 256, %s35_s17, [#allocation8], %s171_s12, %s171_s12, %s172_s13  }
  0x18   :  { %166 = dma.done.wait [#allocation6], 256  }
  0x19   :  { %167 = vsyncadd [#allocation6], 4294967040 }
  0x1a   :  { %168 = dma.done.wait [#allocation8], 256  }
  0x1b   :  { %169 = vsyncadd [#allocation8], 4294967040  ;;  %v174_v0 = vmov 0.0   ;;  %v58_v1 = vld [vmem:[#allocation5] sm:$0xff]  ;;  %v59_v2 = vld [vmem:[#allocation5 + $0x8] sm:$0xff] }
  0x1c   :  { %55 = vst [vmem:[#allocation2] sm:$0x1] %v174_v0  ;;  %56 = vst [vmem:[#allocation3] sm:$0x1] %v174_v0  ;;  %v62_v3 = vmul.f32 0.5, %v58_v1  ;;  %v63_v4 = vmul.f32 0.5, %v59_v2 }
  0x1d   :  { %57 = vst [vmem:[#allocation4] sm:$0x1] %v174_v0  ;;  %v60_v5 = vld [vmem:[#allocation7] sm:$0xff]  ;;  %v61_v6 = vld [vmem:[#allocation7 + $0x8] sm:$0xff] }
  0x1e   :  { %v81_v7 = vadd.f32 %v61_v6, %v60_v5  ;;  %122 = vtanh.f32 %v62_v3 }
  0x1f   :  { %124 = vtanh.f32 %v63_v4 }
  0x20   :  { %v82_v8 = vrot.slane %v81_v7, 4 }
  0x22   :  { %v83_v9 = vadd.f32 %v82_v8, %v81_v7 }
  0x23   :  { %v80_v13 = vld [vmem:[#allocation3] sm:$0x1]  ;;  %v70_v36 = vld [vmem:[#allocation2] sm:$0x1] }
  0x24   :  { %v84_v10 = vrot.slane %v83_v9, 2  ;;  %v90_v39 = vld [vmem:[#allocation4] sm:$0x1] }
  0x26   :  { %v85_v11 = vadd.f32 %v84_v10, %v83_v9 }
  0x28   :  { %v86_v12 = vrot.slane %v85_v11, 1 }
  0x2a   :  { %v87_v14 = vadd.f32 %v86_v12, %v85_v11 }
  0x2b   :  { %v123_v15 = vpop.eup %122 }
  0x2c   :  { %v88_v16 = vadd.f32 %v87_v14, %v80_v13  ;;  %v125_v17 = vpop.eup %124  ;;  %v66_v18 = vadd.f32 1.0, %v123_v15 }
  0x2d   :  { %v67_v19 = vadd.f32 1.0, %v125_v17 }
  0x2e   :  { %89 = vst [vmem:[#allocation3] sm:$0x1] %v88_v16  ;;  %v68_v20 = vmul.f32 0.5, %v66_v18 }
  0x2f   :  { %v69_v21 = vmul.f32 0.5, %v67_v19 }
  0x30   :  { %v91_v22 = vmul.f32 %v68_v20, %v60_v5 }
  0x31   :  { %v71_v23 = vadd.f32 %v69_v21, %v68_v20  ;;  %v92_v24 = vmul.f32 %v69_v21, %v61_v6 }
  0x33   :  { %v72_v25 = vrot.slane %v71_v23, 4  ;;  %v93_v26 = vadd.f32 %v92_v24, %v91_v22 }
  0x35   :  { %v107_v27 = vld [vmem:[#allocation3] sm:$0x1]  ;;  %v73_v28 = vadd.f32 %v72_v25, %v71_v23  ;;  %v94_v29 = vrot.slane %v93_v26, 4 }
  0x36   :  { %108 = vst [vmem:[%s207_s2 + $0x1] sm:$0x1] %v107_v27 }
  0x37   :  { %v74_v30 = vrot.slane %v73_v28, 2  ;;  %v95_v31 = vadd.f32 %v94_v29, %v93_v26 }
  0x39   :  { %v75_v32 = vadd.f32 %v74_v30, %v73_v28  ;;  %v96_v33 = vrot.slane %v95_v31, 2 }
  0x3b   :  { %v76_v34 = vrot.slane %v75_v32, 1  ;;  %v97_v35 = vadd.f32 %v96_v33, %v95_v31 }
  0x3d   :  { %v77_v37 = vadd.f32 %v76_v34, %v75_v32  ;;  %v98_v38 = vrot.slane %v97_v35, 1 }
  0x3f   :  { %v78_v40 = vadd.f32 %v77_v37, %v70_v36  ;;  %v99_v41 = vadd.f32 %v98_v38, %v97_v35 }
  0x41   :  { %79 = vst [vmem:[#allocation2] sm:$0x1] %v78_v40  ;;  %v100_v42 = vadd.f32 %v99_v41, %v90_v39 }
  0x43   :  { %101 = vst [vmem:[#allocation4] sm:$0x1] %v100_v42 }
  0x48   :  { %v105_v43 = vld [vmem:[#allocation2] sm:$0x1] }
  0x49   :  { %106 = vst [vmem:[%s207_s2] sm:$0x1] %v105_v43 }
  0x4a   :  { %v109_v44 = vld [vmem:[#allocation4] sm:$0x1] }
  0x4b   :  { %110 = vst [vmem:[%s207_s2 + $0x2] sm:$0x1] %v109_v44 }
  0x4c   :  { %115 = vsyncpa [#allocation6], 1 }
  0x4d   :  { %116 = vsyncpa [#allocation8], 1 }

</bundles_post_ra>
